<compile_context>
chip_gen: v6e
topology: v6e:2x2x1
jax: 0.10.0
libtpu: 0.0.40
codegen_flags: <defaults>
</compile_context>

<pallas_src>
import numpy as np
import jax
import jax.numpy as jnp
from jax.experimental import pallas as pl
from jax.experimental.pallas import tpu as pltpu


def make_sinusoid_table(n_position: int, d_hid: int) -> jnp.ndarray:
    """Replicates PositionalEncoding._get_sinusoid_encoding_table exactly."""
    hid_j = np.arange(d_hid)
    denominator = 1.0 / np.power(10000.0, 2.0 * (hid_j // 2) / d_hid)  # (d_hid,)
    denominator = denominator.reshape(1, -1).astype(np.float64)
    pos = np.arange(n_position, dtype=np.float64).reshape(-1, 1)       # (n_position, 1)
    table = pos * denominator                                          # (n_position, d_hid)
    table[:, 0::2] = np.sin(table[:, 0::2])
    table[:, 1::2] = np.cos(table[:, 1::2])
    return jnp.asarray(table[None, :, :], dtype=jnp.float32)           # (1, n_position, d_hid)


def _add_pos_kernel(x_ref, pos_ref, o_ref):
    # x_ref/o_ref: (TB, TL, D); pos_ref: (1, TL, D) broadcast over the batch
    # tile by the VPU add. Promotion to f32 (if x is low precision) happens
    # in-register; cast only on store.
    o_ref[...] = (x_ref[...] + pos_ref[...]).astype(o_ref.dtype)


def _target_block_bytes() -> int:
    """Per-generation block-size target (bigger blocks amortize grid overhead)."""
    try:
        info = pltpu.get_tpu_info()
        vmem = getattr(info, "vmem_capacity_bytes", 128 << 20)
    except Exception:
        vmem = 128 << 20
    if vmem <= (64 << 20):
        # v7x-class: 3.2 TB/s HBM makes per-step overhead costly; 4 MiB blocks
        # (~24 MiB double-buffered worst case) fit its 32 MiB scoped default.
        return 4 << 20
    # v5e/v6e: 2 MiB blocks keep worst-case (~12 MiB) inside v5e's 16 MiB default.
    return 2 << 20


def _choose_tiles(B: int, L: int, D: int, itemsize: int, target_bytes: int):
    """Pick (TB, TL) for (TB, TL, D) blocks of ~target_bytes, layout-legal."""
    sub = max(8, 32 // itemsize)                 # sublane granularity for the L axis
    row_bytes = max(1, D * itemsize)
    budget_rows = max(1, target_bytes // row_bytes)   # TB * TL <= budget_rows
    if L <= budget_rows:
        TL = L                                   # full L: exempt from the 8-divisibility rule
        TB = max(1, min(B, budget_rows // max(L, 1)))
    else:
        TB = 1
        TL = min(L, max(sub, (budget_rows // sub) * sub))
    # v7x has 2 TensorCores: make sure a non-trivial problem yields >= 2 blocks
    # along a "parallel" axis so both cores get work. Tiny inputs stay single-block.
    block_bytes = TB * TL * D * itemsize
    if pl.cdiv(B, TB) * pl.cdiv(L, TL) < 2 and block_bytes >= (256 << 10):
        if TB > 1:
            TB = pl.cdiv(TB, 2)
        elif L >= 2 * sub:
            TL = max(sub, ((TL // 2) // sub) * sub)
    return TB, TL


@jax.jit
def positional_encoding_forward(x: jnp.ndarray, pos_table: jnp.ndarray) -> jnp.ndarray:
    """x: (B, L, D); pos_table: (1, n_position, D) f32. Returns x + pos_table[:, :L]."""
    B, L, D = x.shape
    n_position = pos_table.shape[1]
    assert L <= n_position, f"sequence length {L} exceeds n_position {n_position}"

    # Static slice of the (small) table; keep it f32 for PyTorch-matching promotion.
    pos = jax.lax.slice_in_dim(pos_table, 0, L, axis=1)          # (1, L, D)

    out_dtype = jnp.promote_types(x.dtype, pos_table.dtype)
    x_itemsize = jnp.dtype(x.dtype).itemsize
    out_itemsize = jnp.dtype(out_dtype).itemsize

    TB, TL = _choose_tiles(B, L, D, x_itemsize, _target_block_bytes())
    # Batch is the innermost (fastest-varying) grid axis: the pos block index
    # is constant across consecutive steps, so its re-DMA is elided.
    grid = (pl.cdiv(L, TL), pl.cdiv(B, TB))

    # In-place-safe add: reuse x's buffer when the dtypes line up.
    aliases = {0: 0} if out_dtype == x.dtype else {}

    out = pl.pallas_call(
        _add_pos_kernel,
        out_shape=jax.ShapeDtypeStruct((B, L, D), out_dtype),
        grid_spec=pltpu.PrefetchScalarGridSpec(
            num_scalar_prefetch=0,
            grid=grid,
            in_specs=[
                pl.BlockSpec((TB, TL, D), lambda l, b: (b, l, 0)),   # x tile
                pl.BlockSpec((1, TL, D), lambda l, b: (0, l, 0)),    # pos tile, constant over b
            ],
            out_specs=pl.BlockSpec((TB, TL, D), lambda l, b: (b, l, 0)),
        ),
        compiler_params=pltpu.CompilerParams(
            dimension_semantics=("parallel", "parallel"),
        ),
        input_output_aliases=aliases,
        cost_estimate=pl.CostEstimate(
            flops=B * L * D,
            transcendentals=0,
            bytes_accessed=B * L * D * (x_itemsize + out_itemsize) + L * D * 4,
        ),
    )(x, pos)
    return out


if __name__ == "__main__":
    key = jax.random.PRNGKey(0)
    n_position = 200

    # Case 1: module-like small shapes (D < 128 lanes; partial-lane stores OK).
    B, L, D = 2, 8, 32
    x = jax.random.normal(key, (B, L, D), dtype=jnp.float32)
    tbl = make_sinusoid_table(n_position, D)
    out = jax.block_until_ready(positional_encoding_forward(x, tbl))
    ref = x + tbl[:, :L, :]
    np.testing.assert_allclose(np.asarray(out), np.asarray(ref), rtol=1e-6, atol=1e-6)

    # Case 2: 128-wide hidden dim with L not a multiple of 8 (TL == full L block).
    B2, L2, D2 = 3, 12, 128
    x2 = jax.random.normal(jax.random.PRNGKey(1), (B2, L2, D2), dtype=jnp.float32)
    tbl2 = make_sinusoid_table(n_position, D2)
    out2 = jax.block_until_ready(positional_encoding_forward(x2, tbl2))
    ref2 = x2 + tbl2[:, :L2, :]
    np.testing.assert_allclose(np.asarray(out2), np.asarray(ref2), rtol=1e-6, atol=1e-6)

    # Case 3: bf16 activations + f32 table -> f32 output (PyTorch-style promotion).
    B3, L3, D3 = 2, 16, 64
    x3 = jax.random.normal(jax.random.PRNGKey(2), (B3, L3, D3), dtype=jnp.bfloat16)
    tbl3 = make_sinusoid_table(n_position, D3)
    out3 = jax.block_until_ready(positional_encoding_forward(x3, tbl3))
    assert out3.dtype == jnp.float32
    ref3 = x3.astype(jnp.float32) + tbl3[:, :L3, :]
    np.testing.assert_allclose(np.asarray(out3), np.asarray(ref3), rtol=1e-6, atol=1e-6)

    print("KERNEL_OK")
</pallas_src>

<mosaic_0001>
module attributes {stable_mosaic.version = 11 : i64} {
  func.func @_add_pos_kernel(%arg0: i32, %arg1: i32, %arg2: memref<2x8x32xf32, #tpu.memory_space<vmem>>, %arg3: memref<1x8x32xf32, #tpu.memory_space<vmem>>, %arg4: memref<2x8x32xf32, #tpu.memory_space<vmem>>) attributes {dimension_semantics = [#tpu.dimension_semantics<parallel>, #tpu.dimension_semantics<parallel>], iteration_bounds = array<i64: 1, 1>, scalar_prefetch = 0 : i64, scratch_operands = 0 : i64, tpu.core_type = #tpu.core_type<tc>, window_params = [{transform_indices = @transform_0, window_bounds = array<i64: 2, 8, 32>}, {transform_indices = @transform_1, window_bounds = array<i64: 1, 8, 32>}, {transform_indices = @transform_2, window_bounds = array<i64: 2, 8, 32>}]} {
    %c0 = arith.constant 0 : index
    %c0_0 = arith.constant 0 : index
    %c0_1 = arith.constant 0 : index
    %0 = vector.load %arg2[%c0, %c0_0, %c0_1] : memref<2x8x32xf32, #tpu.memory_space<vmem>>, vector<2x8x32xf32>
    %c0_2 = arith.constant 0 : index
    %c0_3 = arith.constant 0 : index
    %c0_4 = arith.constant 0 : index
    %1 = vector.load %arg3[%c0_2, %c0_3, %c0_4] : memref<1x8x32xf32, #tpu.memory_space<vmem>>, vector<1x8x32xf32>
    %2 = vector.broadcast %1 : vector<1x8x32xf32> to vector<2x8x32xf32>
    %3 = arith.addf %0, %2 : vector<2x8x32xf32>
    %c0_5 = arith.constant 0 : index
    %c0_6 = arith.constant 0 : index
    %c0_7 = arith.constant 0 : index
    %4 = vector.load %arg4[%c0_5, %c0_6, %c0_7] : memref<2x8x32xf32, #tpu.memory_space<vmem>>, vector<2x8x32xf32>
    tpu.vector_store %arg4[%c0_5, %c0_6, %c0_7], %3 {strides = array<i32>} : memref<2x8x32xf32, #tpu.memory_space<vmem>>, vector<2x8x32xf32>,
    return
  }
  func.func @transform_0(%arg0: i32, %arg1: i32) -> (i32, i32, i32) {
    %c0_i32 = arith.constant 0 : i32
    %c0_i32_0 = arith.constant 0 : i32
    return %arg1, %arg0, %c0_i32 : i32, i32, i32
  }
  func.func @transform_1(%arg0: i32, %arg1: i32) -> (i32, i32, i32) {
    %c0_i32 = arith.constant 0 : i32
    %c0_i32_0 = arith.constant 0 : i32
    %c0_i32_1 = arith.constant 0 : i32
    return %c0_i32, %arg0, %c0_i32_0 : i32, i32, i32
  }
  func.func @transform_2(%arg0: i32, %arg1: i32) -> (i32, i32, i32) {
    %c0_i32 = arith.constant 0 : i32
    %c0_i32_0 = arith.constant 0 : i32
    return %arg1, %arg0, %c0_i32 : i32, i32, i32
  }
}

</mosaic_0001>

<bundles_post_ra>
// kernel: positional_encoding_forward.1
= control target key start
LH: loop header
LB: loop body
LE: loop exit
PB: predicated region body
PF: predicated region fallthrough
CT: control target
= control target key end

     0   :  { %7 = vsyncpa [#allocation3], 0  ;;  %s127_s0 = inlined_call_operand.hbm [shape: f32[2,8,32], index: 0, kind: input, shape index: {}, may-alias: {0,2}]   ;;  %s128_s1 = inlined_call_operand.vmem [shape: f32[1,8,32], index: 1, kind: input, shape index: {}]   ;;  %s129_s2 = inlined_call_operand.hbm [shape: f32[2,8,32], index: 2, kind: output, shape index: {}, may-alias: {0,2}]  }
   0x1   :  { %8 = vsyncpa [#allocation4], 0  ;;  %s99_s9 = smov [#allocation2]  }
   0x2   :  { %s14_s10 = sshll.u32 %s99_s9, 4  ;;  %s15_s10 = int_to_ptr.vmem [resolvable:$true] %s14_s10 }
   0x3   :  { %s63_s11 = scalar_lea.vmem %s15_s10, 256  ;;  %p68_p1 = scmp.lt.s32.totalorder %s15_s10, %s15_s10 }
   0x4   :  { %p64_p0 = scmp.ne.s32.totalorder %s15_s10, %s63_s11  ;;  %p69_p2 = scmp.lt.s32.totalorder %s63_s11, %s63_s11 }
   0x6   :  { %p70_p3 = por %p69_p2, %p68_p1 }
   0x8   :  { %p71_p4 = pnand %p70_p3, %p64_p0 }
   0xa   :  { %74 = shalt.err (!%p71_p4)
}
   0xb   :  { %s100_s12 = smov 128   ;;  %s101_s13 = smov 8  }
   0xc   :  { %20 = dma.hbm_to_vmem [thread:$0]  %s127_s0, 256, %s15_s10, [#allocation3], %s100_s12, %s100_s12, %s101_s13  }
   0xd   :  { %95 = dma.done.wait [#allocation3], 256  }
   0xe   :  { %96 = vsyncadd [#allocation3], 4294967040  ;;  %s102_s16 = smov [#allocation5]   ;;  %v26_v0 = vld [vmem:[#allocation2] sm:$0xff]  ;;  %vm31_vm0 = vcmask 261120   ;;  %v27_v2 = vld [vmem:[#allocation2 + $0x8] sm:$0xff] }
   0xf   :  { %s39_s17 = sshll.u32 %s102_s16, 4  ;;  %v28_v1 = vld [vmem:[%s128_s1] sm:$0xff]  ;;  %s40_s17 = int_to_ptr.vmem [resolvable:$true] %s39_s17 }
  0x10   :  { %v29_v3 = vadd.f32 %v28_v1, %v26_v0  ;;  %v30_v4 = vadd.f32 %v28_v1, %v27_v2  ;;  %s75_s20 = scalar_lea.vmem %s40_s17, 256  ;;  %p80_p6 = scmp.lt.s32.totalorder %s40_s17, %s40_s17 }
  0x11   :  { %p76_p5 = scmp.ne.s32.totalorder %s40_s17, %s75_s20  ;;  %p81_p7 = scmp.lt.s32.totalorder %s75_s20, %s75_s20 }
  0x12   :  { %32 = vst.msk [vmem:[#allocation5] sm:$0xff] %vm31_vm0, %v29_v3  ;;  %33 = vst.msk [vmem:[#allocation5 + $0x8] sm:$0xff] %vm31_vm0, %v30_v4 }
  0x13   :  { %p82_p8 = por %p81_p7, %p80_p6 }
  0x15   :  { %p83_p9 = pnand %p82_p8, %p76_p5 }
  0x17   :  { %86 = shalt.err (!%p83_p9)
}
  0x18   :  { %45 = dma.vmem_to_hbm [thread:$0]  %s40_s17, 256, %s129_s2, [#allocation4], %s100_s12, %s100_s12, %s101_s13  }
  0x19   :  { %97 = dma.done.wait [#allocation4], 256  }
  0x1a   :  { %98 = vsyncadd [#allocation4], 4294967040 }
  0x1b   :  { %49 = vsyncpa [#allocation3], 1 }
  0x1c   :  { %50 = vsyncpa [#allocation4], 1 }

</bundles_post_ra>
